<compile_context>
chip_gen: v6e
topology: v6e:2x2x1
jax: 0.10.0
libtpu: 0.0.40
codegen_flags: <defaults>
</compile_context>

<pallas_src>
import math
import functools

import jax
import jax.numpy as jnp
from jax import lax
from jax.experimental import pallas as pl
from jax.experimental.pallas import tpu as pltpu
import numpy as np


def _attention_kernel(x_ref, wq_ref, wk_ref, wv_ref, wo_ref,
                      bq_ref, bk_ref, bv_ref, bo_ref, o_ref,
                      kh_ref, vh_ref, qh_ref,
                      *, n_heads: int, head_dim: int, q_tile: int,
                      softmax_dtype):
    H, hd, TQ = n_heads, head_dim, q_tile
    f32 = jnp.float32
    mm_dtype = wq_ref.dtype                       # MXU input dtype (f32 or bf16)
    S = kh_ref.shape[1]
    qi = pl.program_id(1)
    n_kv = pl.num_programs(1)                     # KV tile size == q_tile

    # ---- once per batch: K/V projection + head split into VMEM scratch -----
    @pl.when(qi == 0)
    def _():
        x_all = x_ref[0]                                               # (S, D)
        k = jnp.dot(x_all, wk_ref[...], preferred_element_type=f32) + bk_ref[...]
        v = jnp.dot(x_all, wv_ref[...], preferred_element_type=f32) + bv_ref[...]
        for h in range(H):        # once per batch — amortized over all q-tiles
            kh_ref[h] = k[:, h * hd:(h + 1) * hd].astype(mm_dtype)
            vh_ref[h] = v[:, h * hd:(h + 1) * hd].astype(mm_dtype)

    # ---- per q-tile: Q projection (softmax scale pre-folded into wq/bq) ----
    q0 = pl.multiple_of(qi * TQ, TQ)
    xq = x_ref[0, pl.ds(q0, TQ), :]                                    # (TQ, D)
    q = jnp.dot(xq, wq_ref[...], preferred_element_type=f32) + bq_ref[...]
    for h in range(H):            # only remaining per-step lane relayout, O(TQ*D)
        qh_ref[h] = q[:, h * hd:(h + 1) * hd].astype(mm_dtype)
    qh = qh_ref[...]                                                   # (H, TQ, hd)

    # ---- online softmax over the not-fully-masked KV tiles [qi, n_kv) ------
    # Module semantics: attn_mask = triu(ones, 1).bool() => attend only to
    # strictly FUTURE keys (col > row), so key tiles before the q-tile are
    # skipped entirely (structural ~2x saving on scores/exp/PV).
    rows = q0 + lax.broadcasted_iota(jnp.int32, (TQ, TQ), 0)
    cols = lax.broadcasted_iota(jnp.int32, (TQ, TQ), 1)

    def kv_step(t, carry):
        m_prev, l_prev, acc_prev = carry
        k0 = pl.multiple_of(t * TQ, TQ)
        kh_t = kh_ref[:, pl.ds(k0, TQ), :]                             # (H, TK, hd)
        vh_t = vh_ref[:, pl.ds(k0, TQ), :]
        s = jnp.einsum('hqd,hkd->hqk', qh, kh_t,
                       preferred_element_type=f32)                     # (H, TQ, TK) f32
        allowed = (k0 + cols) > rows                                   # fp32 -inf mask
        s = jnp.where(allowed[None, :, :], s, -jnp.inf)

        m_new = jnp.maximum(m_prev, jnp.max(s, axis=-1, keepdims=True))
        # Rows with no allowed key yet keep m == -inf: exp against a 0 reference
        # gives p == 0 and leaves l == 0, so the fully-masked last query row ends
        # as acc * (1/0) = 0 * inf = NaN — identical to torch SDPA's math path.
        safe_m = jnp.where(m_new == -jnp.inf, 0.0, m_new)
        alpha = jnp.exp(m_prev - safe_m)
        p = jnp.exp((s - safe_m).astype(softmax_dtype))   # bf16 exp on v6e/v7x path
        l_new = alpha * l_prev + jnp.sum(p.astype(f32), axis=-1, keepdims=True)
        acc_new = alpha * acc_prev + jnp.einsum(
            'hqk,hkd->hqd', p.astype(mm_dtype), vh_t, preferred_element_type=f32)
        return m_new, l_new, acc_new

    carry0 = (jnp.full((H, TQ, 1), -jnp.inf, f32),
              jnp.zeros((H, TQ, 1), f32),
              jnp.zeros((H, TQ, hd), f32))
    _, l_fin, acc_fin = lax.fori_loop(qi, n_kv, kv_step, carry0)

    # Exact reciprocal so the masked row's 0 * inf = NaN is preserved
    # (approx=True is a free EUP slot in production if NaN parity is not needed).
    o_heads = acc_fin * pl.reciprocal(l_fin, approx=False)             # (H, TQ, hd)

    # ---- output projection with the head merge folded in (no lane concat) --
    partial = jnp.einsum('hqd,hdo->hqo', o_heads.astype(mm_dtype), wo_ref[...],
                         preferred_element_type=f32)                   # (H, TQ, D)
    out = jnp.sum(partial, axis=0) + bo_ref[...]                       # (TQ, D)
    o_ref[0] = out.astype(o_ref.dtype)


def _vmem_capacity_bytes() -> int:
    try:
        cap = getattr(pltpu.get_tpu_info(), "vmem_capacity_bytes", None)
        if cap:
            return int(cap)
    except Exception:
        pass
    try:
        if "7" in jax.devices()[0].device_kind.lower():
            return 64 * 1024 * 1024                 # v7x: 64 MiB per TensorCore
    except Exception:
        pass
    return 128 * 1024 * 1024                        # v5e / v6e


def _chip_has_bf16_vpu() -> bool:
    """v6e / v7x have bf16 VPU/EUP paths; v5e and older do not."""
    try:
        kind = jax.devices()[0].device_kind.lower()
    except Exception:
        return False
    return any(tag in kind for tag in ("v6", "v7", "tpu7", "7x"))


def _pick_q_tile(S: int, D: int, n_heads: int, mm_itemsize: int, vmem_cap: int) -> int:
    # resident independently of TQ: x block + K/V head scratch + weights (dbl-buffered)
    base = 4 * S * D * mm_itemsize + 8 * D * D * mm_itemsize
    for t in (256, 128):
        if S % t == 0:
            tile_bytes = 3 * n_heads * t * t * 4 + 4 * t * D * 4
            if base + tile_bytes <= vmem_cap // 2:
                return t
    if S % 128 == 0:
        return 128
    return S


def attention_forward(x, params, n_heads: int, *,
                      matmul_dtype=jnp.float32, softmax_dtype=None, q_tile=None):
    """x: (B, S, D) float32. params: transposed weights (in,out) + (1,D) biases."""
    B, S, D = x.shape
    H = n_heads
    head_dim = D // n_heads
    scale = 1.0 / math.sqrt(head_dim)
    mm_itemsize = jnp.dtype(matmul_dtype).itemsize
    vmem_cap = _vmem_capacity_bytes()

    softmax_dtype = jnp.dtype(jnp.float32 if softmax_dtype is None else softmax_dtype)
    if q_tile is None:
        q_tile = _pick_q_tile(S, D, H, mm_itemsize, vmem_cap)
    assert S % q_tile == 0
    nq = S // q_tile

    # MXU input dtype (bf16 recommended on v6e/v7x); biases & accumulation stay f32.
    x_mm = x.astype(matmul_dtype)
    wq = (params["wq_t"] * scale).astype(matmul_dtype)   # softmax scale folded in
    bq = params["bq"] * scale
    wk = params["wk_t"].astype(matmul_dtype)
    wv = params["wv_t"].astype(matmul_dtype)
    # Output weight pre-split by head on the host: rows of wo_t are the
    # concatenated heads, so (D, D) -> (H, hd, D) groups rows per head.
    wo_h = params["wo_t"].reshape(H, head_dim, D).astype(matmul_dtype)
    bk, bv, bo = params["bk"], params["bv"], params["bo"]

    kernel = functools.partial(_attention_kernel, n_heads=H, head_dim=head_dim,
                               q_tile=q_tile, softmax_dtype=softmax_dtype)

    # Constant-index blocks (fetched once; on v7x they could additionally be
    # single-buffered with pipeline_mode=pl.Buffered(1) to halve weight VMEM).
    w_spec = pl.BlockSpec((D, D), lambda b, qi: (0, 0))
    wo_spec = pl.BlockSpec((H, head_dim, D), lambda b, qi: (0, 0, 0))
    b_spec = pl.BlockSpec((1, D), lambda b, qi: (0, 0))

    # Cost estimate (projections once per batch + masked-prefix-skipped attention).
    kv_positions = nq * S - q_tile * (nq * (nq - 1)) // 2
    pairs = q_tile * kv_positions                 # processed (q, key) pairs / batch / head
    flops = int(8 * B * S * D * D + 4 * B * pairs * D)
    transcendentals = int(B * H * pairs)
    bytes_accessed = int(B * S * D * mm_itemsize + 4 * D * D * mm_itemsize
                         + 4 * D * 4 + B * S * D * 4)
    cost = pl.CostEstimate(flops=flops, transcendentals=transcendentals,
                           bytes_accessed=bytes_accessed)

    buf_bytes = (2 * S * D * mm_itemsize              # x block (double-buffered)
                 + 8 * D * D * mm_itemsize            # weights (double-buffered)
                 + 2 * 4 * D * 4                      # biases
                 + 2 * q_tile * D * 4                 # output block
                 + 2 * S * D * mm_itemsize            # kh / vh scratch
                 + q_tile * D * mm_itemsize           # qh scratch
                 + 3 * H * q_tile * q_tile * 4        # s / p / mask temporaries
                 + 2 * H * q_tile * head_dim * 4      # acc / o_heads
                 + 2 * H * q_tile * 128 * 4)          # m / l (lane-padded)
    vmem_limit = int(min(max(2 * buf_bytes, 32 * 1024 * 1024), (3 * vmem_cap) // 4))

    return pl.pallas_call(
        kernel,
        out_shape=jax.ShapeDtypeStruct((B, S, D), jnp.float32),
        grid=(B, nq),
        in_specs=[
            pl.BlockSpec((1, S, D), lambda b, qi: (b, 0, 0)),  # x (queries sliced in-kernel)
            w_spec, w_spec, w_spec, wo_spec,                   # wq wk wv (in,out), wo (H,hd,D)
            b_spec, b_spec, b_spec, b_spec,                    # bq bk bv bo
        ],
        out_specs=pl.BlockSpec((1, q_tile, D), lambda b, qi: (b, qi, 0)),
        scratch_shapes=[
            pltpu.VMEM((H, S, head_dim), matmul_dtype),        # K heads (per-batch cache)
            pltpu.VMEM((H, S, head_dim), matmul_dtype),        # V heads (per-batch cache)
            pltpu.VMEM((H, q_tile, head_dim), matmul_dtype),   # Q heads (per-tile)
        ],
        compiler_params=pltpu.CompilerParams(
            # batch axis parallel (megacore split); q-tile axis arbitrary because
            # the per-batch K/V scratch cache is carried across q-tiles.
            dimension_semantics=("parallel", "arbitrary"),
            vmem_limit_bytes=vmem_limit),
        cost_estimate=cost,
    )(x_mm, wq, wk, wv, wo_h, bq, bk, bv, bo)


def make_params(key, n_embd: int):
    """Deterministic synthetic parameters (Linear weight (out,in), stored transposed)."""
    keys = jax.random.split(key, 8)
    bound = 1.0 / math.sqrt(n_embd)

    def w(k):
        return jax.random.uniform(k, (n_embd, n_embd), jnp.float32, -bound, bound).T

    def b(k):
        return jax.random.uniform(k, (1, n_embd), jnp.float32, -bound, bound)

    return {
        "wq_t": w(keys[0]), "bq": b(keys[1]),
        "wk_t": w(keys[2]), "bk": b(keys[3]),
        "wv_t": w(keys[4]), "bv": b(keys[5]),
        "wo_t": w(keys[6]), "bo": b(keys[7]),
    }


def reference_forward(x, params, n_heads: int):
    """Pure-JAX reference mirroring the PyTorch forward (incl. the triu(1) mask)."""
    B, S, D = x.shape
    hd = D // n_heads
    q = x @ params["wq_t"] + params["bq"]
    k = x @ params["wk_t"] + params["bk"]
    v = x @ params["wv_t"] + params["bv"]

    def split(t):  # (B, S, D) -> (B, H, S, hd)
        return t.reshape(B, S, n_heads, hd).transpose(0, 2, 1, 3)

    q, k, v = split(q), split(k), split(v)
    s = jnp.einsum("bhqd,bhkd->bhqk", q, k) / math.sqrt(hd)
    row = lax.broadcasted_iota(jnp.int32, (S, S), 0)
    col = lax.broadcasted_iota(jnp.int32, (S, S), 1)
    s = jnp.where(col > row, s, -jnp.inf)
    m = jnp.max(s, axis=-1, keepdims=True)
    p = jnp.exp(s - m)
    attn = p / jnp.sum(p, axis=-1, keepdims=True)
    o = jnp.einsum("bhqk,bhkd->bhqd", attn, v)
    o = o.transpose(0, 2, 1, 3).reshape(B, S, D)
    return o @ params["wo_t"] + params["bo"]


if __name__ == "__main__":
    B, S, n_embd, n_heads = 2, 8, 32, 4

    key = jax.random.PRNGKey(0)
    k_x, k_p = jax.random.split(key)
    x = jax.random.normal(k_x, (B, S, n_embd), jnp.float32)
    params = make_params(k_p, n_embd)

    ref = jax.block_until_ready(reference_forward(x, params, n_heads))

    # fp32 MXU path: tight tolerance (NaN last row matches torch / the reference).
    out_f32 = jax.block_until_ready(attention_forward(x, params, n_heads))
    np.testing.assert_allclose(np.asarray(out_f32), np.asarray(ref),
                               rtol=1e-5, atol=1e-5, equal_nan=True)

    # bf16 MXU-input path (fp32 accumulation); softmax exp runs in bf16 only on
    # chips with a bf16 VPU/EUP (v6e/v7x) — v5e keeps the softmax in fp32.
    sm_dtype = jnp.bfloat16 if _chip_has_bf16_vpu() else jnp.float32
    out_bf16 = jax.block_until_ready(
        attention_forward(x, params, n_heads,
                          matmul_dtype=jnp.bfloat16, softmax_dtype=sm_dtype))
    np.testing.assert_allclose(np.asarray(out_bf16), np.asarray(ref),
                               rtol=5e-2, atol=5e-2, equal_nan=True)

    print("KERNEL_OK")
</pallas_src>

<mosaic_0001>
module attributes {stable_mosaic.version = 11 : i64} {
  func.func @_attention_kernel(%arg0: i32, %arg1: i32, %arg2: memref<1x8x32xf32, #tpu.memory_space<vmem>>, %arg3: memref<32x32xf32, #tpu.memory_space<vmem>>, %arg4: memref<32x32xf32, #tpu.memory_space<vmem>>, %arg5: memref<32x32xf32, #tpu.memory_space<vmem>>, %arg6: memref<4x8x32xf32, #tpu.memory_space<vmem>>, %arg7: memref<1x32xf32, #tpu.memory_space<vmem>>, %arg8: memref<1x32xf32, #tpu.memory_space<vmem>>, %arg9: memref<1x32xf32, #tpu.memory_space<vmem>>, %arg10: memref<1x32xf32, #tpu.memory_space<vmem>>, %arg11: memref<1x8x32xf32, #tpu.memory_space<vmem>>, %arg12: memref<4x8x8xf32, #tpu.memory_space<vmem>>, %arg13: memref<4x8x8xf32, #tpu.memory_space<vmem>>, %arg14: memref<4x8x8xf32, #tpu.memory_space<vmem>>) attributes {dimension_semantics = [#tpu.dimension_semantics<parallel>, #tpu.dimension_semantics<arbitrary>], iteration_bounds = array<i64: 2, 1>, scalar_prefetch = 0 : i64, scratch_operands = 3 : i64, tpu.core_type = #tpu.core_type<tc>, window_params = [{transform_indices = @transform_0, window_bounds = array<i64: 1, 8, 32>}, {pipeline_mode = #tpu.pipeline_mode<synchronous>, transform_indices = @transform_1, window_bounds = array<i64: 32, 32>}, {pipeline_mode = #tpu.pipeline_mode<synchronous>, transform_indices = @transform_2, window_bounds = array<i64: 32, 32>}, {pipeline_mode = #tpu.pipeline_mode<synchronous>, transform_indices = @transform_3, window_bounds = array<i64: 32, 32>}, {pipeline_mode = #tpu.pipeline_mode<synchronous>, transform_indices = @transform_4, window_bounds = array<i64: 4, 8, 32>}, {pipeline_mode = #tpu.pipeline_mode<synchronous>, transform_indices = @transform_5, window_bounds = array<i64: 1, 32>}, {pipeline_mode = #tpu.pipeline_mode<synchronous>, transform_indices = @transform_6, window_bounds = array<i64: 1, 32>}, {pipeline_mode = #tpu.pipeline_mode<synchronous>, transform_indices = @transform_7, window_bounds = array<i64: 1, 32>}, {pipeline_mode = #tpu.pipeline_mode<synchronous>, transform_indices = @transform_8, window_bounds = array<i64: 1, 32>}, {transform_indices = @transform_9, window_bounds = array<i64: 1, 8, 32>}]} {
    %c0_i32 = arith.constant 0 : i32
    %0 = arith.cmpi eq, %arg1, %c0_i32 : i32
    %1 = arith.extui %0 : i1 to i32
    %c0_i32_0 = arith.constant 0 : i32
    %2 = arith.cmpi ne, %1, %c0_i32_0 : i32
    scf.if %2 {
      %c0_32 = arith.constant 0 : index
      %c0_33 = arith.constant 0 : index
      %c0_34 = arith.constant 0 : index
      %52 = vector.load %arg2[%c0_32, %c0_33, %c0_34] : memref<1x8x32xf32, #tpu.memory_space<vmem>>, vector<1x8x32xf32>
      %53 = vector.shape_cast %52 : vector<1x8x32xf32> to vector<8x32xf32>
      %c0_35 = arith.constant 0 : index
      %c0_36 = arith.constant 0 : index
      %54 = vector.load %arg4[%c0_35, %c0_36] : memref<32x32xf32, #tpu.memory_space<vmem>>, vector<32x32xf32>
      %cst_37 = arith.constant dense<0.000000e+00> : vector<8x32xf32>
      %55 = tpu.matmul %53, %54, %cst_37 {dimension_numbers = #tpu.dot_dimension_numbers<[1], [0], [0], [1], [0, 0, 1, 1], [], []>} : vector<8x32xf32>, vector<32x32xf32>, vector<8x32xf32> -> vector<8x32xf32>
      %c0_38 = arith.constant 0 : index
      %c0_39 = arith.constant 0 : index
      %56 = vector.load %arg8[%c0_38, %c0_39] : memref<1x32xf32, #tpu.memory_space<vmem>>, vector<1x32xf32>
      %57 = vector.broadcast %56 : vector<1x32xf32> to vector<8x32xf32>
      %58 = arith.addf %55, %57 : vector<8x32xf32>
      %c0_40 = arith.constant 0 : index
      %c0_41 = arith.constant 0 : index
      %59 = vector.load %arg5[%c0_40, %c0_41] : memref<32x32xf32, #tpu.memory_space<vmem>>, vector<32x32xf32>
      %cst_42 = arith.constant dense<0.000000e+00> : vector<8x32xf32>
      %60 = tpu.matmul %53, %59, %cst_42 {dimension_numbers = #tpu.dot_dimension_numbers<[1], [0], [0], [1], [0, 0, 1, 1], [], []>} : vector<8x32xf32>, vector<32x32xf32>, vector<8x32xf32> -> vector<8x32xf32>
      %c0_43 = arith.constant 0 : index
      %c0_44 = arith.constant 0 : index
      %61 = vector.load %arg9[%c0_43, %c0_44] : memref<1x32xf32, #tpu.memory_space<vmem>>, vector<1x32xf32>
      %62 = vector.broadcast %61 : vector<1x32xf32> to vector<8x32xf32>
      %63 = arith.addf %60, %62 : vector<8x32xf32>
      %64 = vector.extract_strided_slice %58 {offsets = [0, 0], sizes = [8, 8], strides = [1, 1]} : vector<8x32xf32> to vector<8x8xf32>
      %c0_45 = arith.constant 0 : index
      %c0_46 = arith.constant 0 : index
      %c0_47 = arith.constant 0 : index
      %65 = vector.load %arg12[%c0_45, %c0_46, %c0_47] : memref<4x8x8xf32, #tpu.memory_space<vmem>>, vector<1x8x8xf32>
      %66 = vector.shape_cast %65 : vector<1x8x8xf32> to vector<8x8xf32>
      %67 = vector.shape_cast %64 : vector<8x8xf32> to vector<1x8x8xf32>
      tpu.vector_store %arg12[%c0_45, %c0_46, %c0_47], %67 {strides = array<i32>} : memref<4x8x8xf32, #tpu.memory_space<vmem>>, vector<1x8x8xf32>,
      %68 = vector.extract_strided_slice %63 {offsets = [0, 0], sizes = [8, 8], strides = [1, 1]} : vector<8x32xf32> to vector<8x8xf32>
      %c0_48 = arith.constant 0 : index
      %c0_49 = arith.constant 0 : index
      %c0_50 = arith.constant 0 : index
      %69 = vector.load %arg13[%c0_48, %c0_49, %c0_50] : memref<4x8x8xf32, #tpu.memory_space<vmem>>, vector<1x8x8xf32>
      %70 = vector.shape_cast %69 : vector<1x8x8xf32> to vector<8x8xf32>
      %71 = vector.shape_cast %68 : vector<8x8xf32> to vector<1x8x8xf32>
      tpu.vector_store %arg13[%c0_48, %c0_49, %c0_50], %71 {strides = array<i32>} : memref<4x8x8xf32, #tpu.memory_space<vmem>>, vector<1x8x8xf32>,
      %72 = vector.extract_strided_slice %58 {offsets = [0, 8], sizes = [8, 8], strides = [1, 1]} : vector<8x32xf32> to vector<8x8xf32>
      %c1_51 = arith.constant 1 : index
      %c0_52 = arith.constant 0 : index
      %c0_53 = arith.constant 0 : index
      %73 = vector.load %arg12[%c1_51, %c0_52, %c0_53] : memref<4x8x8xf32, #tpu.memory_space<vmem>>, vector<1x8x8xf32>
      %74 = vector.shape_cast %73 : vector<1x8x8xf32> to vector<8x8xf32>
      %75 = vector.shape_cast %72 : vector<8x8xf32> to vector<1x8x8xf32>
      tpu.vector_store %arg12[%c1_51, %c0_52, %c0_53], %75 {strides = array<i32>} : memref<4x8x8xf32, #tpu.memory_space<vmem>>, vector<1x8x8xf32>,
      %76 = vector.extract_strided_slice %63 {offsets = [0, 8], sizes = [8, 8], strides = [1, 1]} : vector<8x32xf32> to vector<8x8xf32>
      %c1_54 = arith.constant 1 : index
      %c0_55 = arith.constant 0 : index
      %c0_56 = arith.constant 0 : index
      %77 = vector.load %arg13[%c1_54, %c0_55, %c0_56] : memref<4x8x8xf32, #tpu.memory_space<vmem>>, vector<1x8x8xf32>
      %78 = vector.shape_cast %77 : vector<1x8x8xf32> to vector<8x8xf32>
      %79 = vector.shape_cast %76 : vector<8x8xf32> to vector<1x8x8xf32>
      tpu.vector_store %arg13[%c1_54, %c0_55, %c0_56], %79 {strides = array<i32>} : memref<4x8x8xf32, #tpu.memory_space<vmem>>, vector<1x8x8xf32>,
      %80 = vector.extract_strided_slice %58 {offsets = [0, 16], sizes = [8, 8], strides = [1, 1]} : vector<8x32xf32> to vector<8x8xf32>
      %c2_57 = arith.constant 2 : index
      %c0_58 = arith.constant 0 : index
      %c0_59 = arith.constant 0 : index
      %81 = vector.load %arg12[%c2_57, %c0_58, %c0_59] : memref<4x8x8xf32, #tpu.memory_space<vmem>>, vector<1x8x8xf32>
      %82 = vector.shape_cast %81 : vector<1x8x8xf32> to vector<8x8xf32>
      %83 = vector.shape_cast %80 : vector<8x8xf32> to vector<1x8x8xf32>
      tpu.vector_store %arg12[%c2_57, %c0_58, %c0_59], %83 {strides = array<i32>} : memref<4x8x8xf32, #tpu.memory_space<vmem>>, vector<1x8x8xf32>,
      %84 = vector.extract_strided_slice %63 {offsets = [0, 16], sizes = [8, 8], strides = [1, 1]} : vector<8x32xf32> to vector<8x8xf32>
      %c2_60 = arith.constant 2 : index
      %c0_61 = arith.constant 0 : index
      %c0_62 = arith.constant 0 : index
      %85 = vector.load %arg13[%c2_60, %c0_61, %c0_62] : memref<4x8x8xf32, #tpu.memory_space<vmem>>, vector<1x8x8xf32>
      %86 = vector.shape_cast %85 : vector<1x8x8xf32> to vector<8x8xf32>
      %87 = vector.shape_cast %84 : vector<8x8xf32> to vector<1x8x8xf32>
      tpu.vector_store %arg13[%c2_60, %c0_61, %c0_62], %87 {strides = array<i32>} : memref<4x8x8xf32, #tpu.memory_space<vmem>>, vector<1x8x8xf32>,
      %88 = vector.extract_strided_slice %58 {offsets = [0, 24], sizes = [8, 8], strides = [1, 1]} : vector<8x32xf32> to vector<8x8xf32>
      %c3_63 = arith.constant 3 : index
      %c0_64 = arith.constant 0 : index
      %c0_65 = arith.constant 0 : index
      %89 = vector.load %arg12[%c3_63, %c0_64, %c0_65] : memref<4x8x8xf32, #tpu.memory_space<vmem>>, vector<1x8x8xf32>
      %90 = vector.shape_cast %89 : vector<1x8x8xf32> to vector<8x8xf32>
      %91 = vector.shape_cast %88 : vector<8x8xf32> to vector<1x8x8xf32>
      tpu.vector_store %arg12[%c3_63, %c0_64, %c0_65], %91 {strides = array<i32>} : memref<4x8x8xf32, #tpu.memory_space<vmem>>, vector<1x8x8xf32>,
      %92 = vector.extract_strided_slice %63 {offsets = [0, 24], sizes = [8, 8], strides = [1, 1]} : vector<8x32xf32> to vector<8x8xf32>
      %c3_66 = arith.constant 3 : index
      %c0_67 = arith.constant 0 : index
      %c0_68 = arith.constant 0 : index
      %93 = vector.load %arg13[%c3_66, %c0_67, %c0_68] : memref<4x8x8xf32, #tpu.memory_space<vmem>>, vector<1x8x8xf32>
      %94 = vector.shape_cast %93 : vector<1x8x8xf32> to vector<8x8xf32>
      %95 = vector.shape_cast %92 : vector<8x8xf32> to vector<1x8x8xf32>
      tpu.vector_store %arg13[%c3_66, %c0_67, %c0_68], %95 {strides = array<i32>} : memref<4x8x8xf32, #tpu.memory_space<vmem>>, vector<1x8x8xf32>,
    } else {
    }
    %c8_i32 = arith.constant 8 : i32
    %3 = arith.muli %arg1, %c8_i32 : i32
    %4 = tpu.assume_multiple %3, 8 : i32
    %c0 = arith.constant 0 : index
    %5 = arith.index_cast %4 : i32 to index
    %c0_1 = arith.constant 0 : index
    %6 = vector.load %arg2[%c0, %5, %c0_1] : memref<1x8x32xf32, #tpu.memory_space<vmem>>, vector<1x8x32xf32>
    %7 = vector.shape_cast %6 : vector<1x8x32xf32> to vector<8x32xf32>
    %c0_2 = arith.constant 0 : index
    %c0_3 = arith.constant 0 : index
    %8 = vector.load %arg3[%c0_2, %c0_3] : memref<32x32xf32, #tpu.memory_space<vmem>>, vector<32x32xf32>
    %cst = arith.constant dense<0.000000e+00> : vector<8x32xf32>
    %9 = tpu.matmul %7, %8, %cst {dimension_numbers = #tpu.dot_dimension_numbers<[1], [0], [0], [1], [0, 0, 1, 1], [], []>} : vector<8x32xf32>, vector<32x32xf32>, vector<8x32xf32> -> vector<8x32xf32>
    %c0_4 = arith.constant 0 : index
    %c0_5 = arith.constant 0 : index
    %10 = vector.load %arg7[%c0_4, %c0_5] : memref<1x32xf32, #tpu.memory_space<vmem>>, vector<1x32xf32>
    %11 = vector.broadcast %10 : vector<1x32xf32> to vector<8x32xf32>
    %12 = arith.addf %9, %11 : vector<8x32xf32>
    %13 = vector.extract_strided_slice %12 {offsets = [0, 0], sizes = [8, 8], strides = [1, 1]} : vector<8x32xf32> to vector<8x8xf32>
    %c0_6 = arith.constant 0 : index
    %c0_7 = arith.constant 0 : index
    %c0_8 = arith.constant 0 : index
    %14 = vector.load %arg14[%c0_6, %c0_7, %c0_8] : memref<4x8x8xf32, #tpu.memory_space<vmem>>, vector<1x8x8xf32>
    %15 = vector.shape_cast %14 : vector<1x8x8xf32> to vector<8x8xf32>
    %16 = vector.shape_cast %13 : vector<8x8xf32> to vector<1x8x8xf32>
    tpu.vector_store %arg14[%c0_6, %c0_7, %c0_8], %16 {strides = array<i32>} : memref<4x8x8xf32, #tpu.memory_space<vmem>>, vector<1x8x8xf32>,
    %17 = vector.extract_strided_slice %12 {offsets = [0, 8], sizes = [8, 8], strides = [1, 1]} : vector<8x32xf32> to vector<8x8xf32>
    %c1 = arith.constant 1 : index
    %c0_9 = arith.constant 0 : index
    %c0_10 = arith.constant 0 : index
    %18 = vector.load %arg14[%c1, %c0_9, %c0_10] : memref<4x8x8xf32, #tpu.memory_space<vmem>>, vector<1x8x8xf32>
    %19 = vector.shape_cast %18 : vector<1x8x8xf32> to vector<8x8xf32>
    %20 = vector.shape_cast %17 : vector<8x8xf32> to vector<1x8x8xf32>
    tpu.vector_store %arg14[%c1, %c0_9, %c0_10], %20 {strides = array<i32>} : memref<4x8x8xf32, #tpu.memory_space<vmem>>, vector<1x8x8xf32>,
    %21 = vector.extract_strided_slice %12 {offsets = [0, 16], sizes = [8, 8], strides = [1, 1]} : vector<8x32xf32> to vector<8x8xf32>
    %c2 = arith.constant 2 : index
    %c0_11 = arith.constant 0 : index
    %c0_12 = arith.constant 0 : index
    %22 = vector.load %arg14[%c2, %c0_11, %c0_12] : memref<4x8x8xf32, #tpu.memory_space<vmem>>, vector<1x8x8xf32>
    %23 = vector.shape_cast %22 : vector<1x8x8xf32> to vector<8x8xf32>
    %24 = vector.shape_cast %21 : vector<8x8xf32> to vector<1x8x8xf32>
    tpu.vector_store %arg14[%c2, %c0_11, %c0_12], %24 {strides = array<i32>} : memref<4x8x8xf32, #tpu.memory_space<vmem>>, vector<1x8x8xf32>,
    %25 = vector.extract_strided_slice %12 {offsets = [0, 24], sizes = [8, 8], strides = [1, 1]} : vector<8x32xf32> to vector<8x8xf32>
    %c3 = arith.constant 3 : index
    %c0_13 = arith.constant 0 : index
    %c0_14 = arith.constant 0 : index
    %26 = vector.load %arg14[%c3, %c0_13, %c0_14] : memref<4x8x8xf32, #tpu.memory_space<vmem>>, vector<1x8x8xf32>
    %27 = vector.shape_cast %26 : vector<1x8x8xf32> to vector<8x8xf32>
    %28 = vector.shape_cast %25 : vector<8x8xf32> to vector<1x8x8xf32>
    tpu.vector_store %arg14[%c3, %c0_13, %c0_14], %28 {strides = array<i32>} : memref<4x8x8xf32, #tpu.memory_space<vmem>>, vector<1x8x8xf32>,
    %c0_15 = arith.constant 0 : index
    %c0_16 = arith.constant 0 : index
    %c0_17 = arith.constant 0 : index
    %29 = vector.load %arg14[%c0_15, %c0_16, %c0_17] : memref<4x8x8xf32, #tpu.memory_space<vmem>>, vector<4x8x8xf32>
    %30 = tpu.iota {dimensions = array<i32: 0>} : vector<8x8xi32>
    %31 = vector.broadcast %4 : i32 to vector<8x8xi32>
    %32 = arith.addi %31, %30 : vector<8x8xi32>
    %33 = tpu.iota {dimensions = array<i32: 1>} : vector<8x8xi32>
    %cst_18 = arith.constant 0xFF800000 : f32
    %34 = vector.broadcast %cst_18 : f32 to vector<4x8x1xf32>
    %cst_19 = arith.constant 0.000000e+00 : f32
    %35 = vector.broadcast %cst_19 : f32 to vector<4x8x1xf32>
    %cst_20 = arith.constant 0.000000e+00 : f32
    %36 = vector.broadcast %cst_20 : f32 to vector<4x8x8xf32>
    %c1_i32 = arith.constant 1 : i32
    %37 = arith.subi %c1_i32, %arg1 : i32
    %38 = arith.addi %arg1, %37 : i32
    %c1_i32_21 = arith.constant 1 : i32
    %39:3 = scf.for %arg15 = %arg1 to %38 step %c1_i32_21 iter_args(%arg16 = %34, %arg17 = %35, %arg18 = %36) -> (vector<4x8x1xf32>, vector<4x8x1xf32>, vector<4x8x8xf32>)  : i32 {
      %c8_i32_32 = arith.constant 8 : i32
      %52 = arith.muli %arg15, %c8_i32_32 : i32
      %53 = tpu.assume_multiple %52, 8 : i32
      %c0_33 = arith.constant 0 : index
      %54 = arith.index_cast %53 : i32 to index
      %c0_34 = arith.constant 0 : index
      %55 = vector.load %arg12[%c0_33, %54, %c0_34] : memref<4x8x8xf32, #tpu.memory_space<vmem>>, vector<4x8x8xf32>
      %c0_35 = arith.constant 0 : index
      %56 = arith.index_cast %53 : i32 to index
      %c0_36 = arith.constant 0 : index
      %57 = vector.load %arg13[%c0_35, %56, %c0_36] : memref<4x8x8xf32, #tpu.memory_space<vmem>>, vector<4x8x8xf32>
      "tpu.trace_start"() <{level = 10 : i32, message = "hqd,hkd->hqk"}> : () -> ()
      %cst_37 = arith.constant dense<0.000000e+00> : vector<4x8x8xf32>
      %58 = tpu.matmul %29, %55, %cst_37 {dimension_numbers = #tpu.dot_dimension_numbers<[2], [2], [1], [1], [0, 0, 0, 1, 1, 1], [0], [0]>} : vector<4x8x8xf32>, vector<4x8x8xf32>, vector<4x8x8xf32> -> vector<4x8x8xf32>
      "tpu.trace_stop"() : () -> ()
      %59 = vector.broadcast %53 : i32 to vector<8x8xi32>
      %60 = arith.addi %59, %33 : vector<8x8xi32>
      %61 = arith.cmpi sgt, %60, %32 : vector<8x8xi32>
      %62 = vector.shape_cast %61 : vector<8x8xi1> to vector<1x8x8xi1>
      %cst_38 = arith.constant 0xFF800000 : f32
      %63 = vector.shape_cast %62 : vector<1x8x8xi1> to vector<1x8x8xi1>
      %64 = vector.broadcast %63 : vector<1x8x8xi1> to vector<4x8x8xi1>
      %65 = vector.broadcast %cst_38 : f32 to vector<4x8x8xf32>
      %66 = arith.select %64, %58, %65 : vector<4x8x8xi1>, vector<4x8x8xf32>
      %cst_39 = arith.constant dense<0xFF800000> : vector<4x8xf32>
      %67 = vector.multi_reduction <maximumf>, %66, %cst_39 [2] : vector<4x8x8xf32> to vector<4x8xf32>
      %68 = vector.shape_cast %67 : vector<4x8xf32> to vector<4x8x1xf32>
      %69 = arith.maximumf %arg16, %68 : vector<4x8x1xf32>
      %cst_40 = arith.constant 0xFF800000 : f32
      %70 = vector.broadcast %cst_40 : f32 to vector<4x8x1xf32>
      %71 = arith.cmpf oeq, %69, %70 : vector<4x8x1xf32>
      %cst_41 = arith.constant 0.000000e+00 : f32
      %72 = vector.broadcast %cst_41 : f32 to vector<4x8x1xf32>
      %73 = arith.select %71, %72, %69 : vector<4x8x1xi1>, vector<4x8x1xf32>
      %74 = arith.subf %arg16, %73 : vector<4x8x1xf32>
      %75 = math.exp %74 : vector<4x8x1xf32>
      %76 = vector.broadcast %73 : vector<4x8x1xf32> to vector<4x8x8xf32>
      %77 = arith.subf %66, %76 : vector<4x8x8xf32>
      %78 = math.exp %77 : vector<4x8x8xf32>
      %79 = arith.mulf %75, %arg17 : vector<4x8x1xf32>
      %cst_42 = arith.constant dense<0.000000e+00> : vector<4x8xf32>
      %80 = vector.multi_reduction <add>, %78, %cst_42 [2] : vector<4x8x8xf32> to vector<4x8xf32>
      %81 = vector.shape_cast %80 : vector<4x8xf32> to vector<4x8x1xf32>
      %82 = arith.addf %79, %81 : vector<4x8x1xf32>
      %83 = vector.broadcast %75 : vector<4x8x1xf32> to vector<4x8x8xf32>
      %84 = arith.mulf %83, %arg18 : vector<4x8x8xf32>
      "tpu.trace_start"() <{level = 10 : i32, message = "hqk,hkd->hqd"}> : () -> ()
      %cst_43 = arith.constant dense<0.000000e+00> : vector<4x8x8xf32>
      %85 = tpu.matmul %78, %57, %cst_43 {dimension_numbers = #tpu.dot_dimension_numbers<[2], [1], [1], [2], [0, 0, 0, 1, 1, 2], [0], [0]>} : vector<4x8x8xf32>, vector<4x8x8xf32>, vector<4x8x8xf32> -> vector<4x8x8xf32>
      "tpu.trace_stop"() : () -> ()
      %86 = arith.addf %84, %85 : vector<4x8x8xf32>
      scf.yield %69, %82, %86 : vector<4x8x1xf32>, vector<4x8x1xf32>, vector<4x8x8xf32>
    }
    %40 = tpu.reciprocal %39#1 : vector<4x8x1xf32> -> vector<4x8x1xf32>
    %41 = vector.broadcast %40 : vector<4x8x1xf32> to vector<4x8x8xf32>
    %42 = arith.mulf %39#2, %41 : vector<4x8x8xf32>
    %c0_22 = arith.constant 0 : index
    %c0_23 = arith.constant 0 : index
    %c0_24 = arith.constant 0 : index
    %43 = vector.load %arg6[%c0_22, %c0_23, %c0_24] : memref<4x8x32xf32, #tpu.memory_space<vmem>>, vector<4x8x32xf32>
    "tpu.trace_start"() <{level = 10 : i32, message = "hqd,hdo->hqo"}> : () -> ()
    %cst_25 = arith.constant dense<0.000000e+00> : vector<4x8x32xf32>
    %44 = tpu.matmul %42, %43, %cst_25 {dimension_numbers = #tpu.dot_dimension_numbers<[2], [1], [1], [2], [0, 0, 0, 1, 1, 2], [0], [0]>} : vector<4x8x8xf32>, vector<4x8x32xf32>, vector<4x8x32xf32> -> vector<4x8x32xf32>
    "tpu.trace_stop"() : () -> ()
    %cst_26 = arith.constant dense<0.000000e+00> : vector<8x32xf32>
    %45 = vector.multi_reduction <add>, %44, %cst_26 [0] : vector<4x8x32xf32> to vector<8x32xf32>
    %c0_27 = arith.constant 0 : index
    %c0_28 = arith.constant 0 : index
    %46 = vector.load %arg10[%c0_27, %c0_28] : memref<1x32xf32, #tpu.memory_space<vmem>>, vector<1x32xf32>
    %47 = vector.broadcast %46 : vector<1x32xf32> to vector<8x32xf32>
    %48 = arith.addf %45, %47 : vector<8x32xf32>
    %c0_29 = arith.constant 0 : index
    %c0_30 = arith.constant 0 : index
    %c0_31 = arith.constant 0 : index
    %49 = vector.load %arg11[%c0_29, %c0_30, %c0_31] : memref<1x8x32xf32, #tpu.memory_space<vmem>>, vector<1x8x32xf32>
    %50 = vector.shape_cast %49 : vector<1x8x32xf32> to vector<8x32xf32>
    %51 = vector.shape_cast %48 : vector<8x32xf32> to vector<1x8x32xf32>
    tpu.vector_store %arg11[%c0_29, %c0_30, %c0_31], %51 {strides = array<i32>} : memref<1x8x32xf32, #tpu.memory_space<vmem>>, vector<1x8x32xf32>,
    return
  }
  func.func @transform_0(%arg0: i32, %arg1: i32) -> (i32, i32, i32) {
    %c0_i32 = arith.constant 0 : i32
    %c0_i32_0 = arith.constant 0 : i32
    %c0_i32_1 = arith.constant 0 : i32
    return %arg0, %c0_i32, %c0_i32_0 : i32, i32, i32
  }
  func.func @transform_1(%arg0: i32, %arg1: i32) -> (i32, i32) {
    %c0_i32 = arith.constant 0 : i32
    %c0_i32_0 = arith.constant 0 : i32
    %c0_i32_1 = arith.constant 0 : i32
    return %c0_i32, %c0_i32_0 : i32, i32
  }
  func.func @transform_2(%arg0: i32, %arg1: i32) -> (i32, i32) {
    %c0_i32 = arith.constant 0 : i32
    %c0_i32_0 = arith.constant 0 : i32
    %c0_i32_1 = arith.constant 0 : i32
    return %c0_i32, %c0_i32_0 : i32, i32
  }
  func.func @transform_3(%arg0: i32, %arg1: i32) -> (i32, i32) {
    %c0_i32 = arith.constant 0 : i32
    %c0_i32_0 = arith.constant 0 : i32
    %c0_i32_1 = arith.constant 0 : i32
    return %c0_i32, %c0_i32_0 : i32, i32
  }
  func.func @transform_4(%arg0: i32, %arg1: i32) -> (i32, i32, i32) {
    %c0_i32 = arith.constant 0 : i32
    %c0_i32_0 = arith.constant 0 : i32
    %c0_i32_1 = arith.constant 0 : i32
    %c0_i32_2 = arith.constant 0 : i32
    return %c0_i32, %c0_i32_0, %c0_i32_1 : i32, i32, i32
  }
  func.func @transform_5(%arg0: i32, %arg1: i32) -> (i32, i32) {
    %c0_i32 = arith.constant 0 : i32
    %c0_i32_0 = arith.constant 0 : i32
    %c0_i32_1 = arith.constant 0 : i32
    return %c0_i32, %c0_i32_0 : i32, i32
  }
  func.func @transform_6(%arg0: i32, %arg1: i32) -> (i32, i32) {
    %c0_i32 = arith.constant 0 : i32
    %c0_i32_0 = arith.constant 0 : i32
    %c0_i32_1 = arith.constant 0 : i32
    return %c0_i32, %c0_i32_0 : i32, i32
  }
  func.func @transform_7(%arg0: i32, %arg1: i32) -> (i32, i32) {
    %c0_i32 = arith.constant 0 : i32
    %c0_i32_0 = arith.constant 0 : i32
    %c0_i32_1 = arith.constant 0 : i32
    return %c0_i32, %c0_i32_0 : i32, i32
  }
  func.func @transform_8(%arg0: i32, %arg1: i32) -> (i32, i32) {
    %c0_i32 = arith.constant 0 : i32
    %c0_i32_0 = arith.constant 0 : i32
    %c0_i32_1 = arith.constant 0 : i32
    return %c0_i32, %c0_i32_0 : i32, i32
  }
  func.func @transform_9(%arg0: i32, %arg1: i32) -> (i32, i32, i32) {
    %c0_i32 = arith.constant 0 : i32
    %c0_i32_0 = arith.constant 0 : i32
    return %arg0, %arg1, %c0_i32 : i32, i32, i32
  }
}

</mosaic_0001>

<bundles_post_ra>
// kernel: tpu_custom_call.1
= control target key start
LH: loop header
LB: loop body
LE: loop exit
PB: predicated region body
PF: predicated region fallthrough
CT: control target
= control target key end

     0   :  { %s3252_s0 = inlined_call_operand.hbm [shape: f32[2,8,32], index: 0, kind: input, shape index: {}]   ;;  %s3253_s1 = inlined_call_operand.hbm [shape: f32[32,32], index: 1, kind: input, shape index: {}]   ;;  %s3254_s2 = inlined_call_operand.hbm [shape: f32[32,32], index: 2, kind: input, shape index: {}]   ;;  %s3255_s3 = inlined_call_operand.hbm [shape: f32[32,32], index: 3, kind: input, shape index: {}]   ;;  %s3256_s4 = inlined_call_operand.hbm [shape: f32[4,8,32], index: 4, kind: input, shape index: {}]   ;;  %s3257_s5 = inlined_call_operand.vmem [shape: f32[1,32], index: 5, kind: input, shape index: {}]   ;;  %s3258_s6 = inlined_call_operand.vmem [shape: f32[1,32], index: 6, kind: input, shape index: {}]   ;;  %s3259_s7 = inlined_call_operand.vmem [shape: f32[1,32], index: 7, kind: input, shape index: {}]   ;;  %s3260_s8 = inlined_call_operand.vmem [shape: f32[1,32], index: 8, kind: input, shape index: {}]   ;;  %s3261_s9 = inlined_call_operand.hbm [shape: f32[2,8,32], index: 9, kind: output, shape index: {}]  }
   0x1   :  { %3264 = sst [smem:[#allocation21_spill]] %s3253_s1 }
   0x2   :  { %3265 = sst [smem:[#allocation22_spill]] %s3254_s2 }
   0x3   :  { %3266 = sst [smem:[#allocation23_spill]] %s3255_s3 }
   0x4   :  { %3267 = sst [smem:[#allocation24_spill]] %s3256_s4 }
   0x5   :  { %14 = vsyncpa [#allocation6], 0 }
   0x6   :  { %16 = vsyncpa [#allocation6 + $0x1], 0 }
   0x7   :  { %17 = vsyncpa [#allocation9], 0 }
   0x8   :  { %18 = vsyncpa [#allocation12], 0 }
   0x9   :  { %19 = vsyncpa [#allocation7], 0 }
   0xa   :  { %21 = vsyncpa [#allocation7 + $0x1], 0  ;;  %s2759_s30 = smov 0   ;;  %s2761_s10 = smov 0  }
   0xb   :  { %s2763_s11 = smov 0   ;;  %s2765_s12 = smov 0  }
   0xc   :  { %s2767_s13 = smov 0   ;;  %s2769_s14 = smov 0  }
   0xd LB: > { %3268 = sst [smem:[#allocation19_spill]] %s2636_s13  ;;  %s1951_s15 = sadd.s32 4294967295, %s2640_s14   ;;  %s2640_s14 = sphi %s2769_s14, %s27_s14   ;;  %s2636_s13 = sphi %s2767_s13, %s3298_s13   ;;  %s2632_s12 = sphi %s2765_s12, %s3297_s12   ;;  %s2628_s11 = sphi %s2763_s11, %s3301_s11   ;;  %s2624_s10 = sphi %s2761_s10, %s3300_s10   ;;  %s2620_s30 = sphi %s2759_s30, %s3299_s30  }
   0xe   : > { %p1953_p0 = scmp.ge.s32.totalorder %s2640_s14, 1  ;;  %p2793_p1 = scmp.eq.s32.totalorder %s1951_s15, 0 }
   0xf   : > { %p266_p2 = scmp.lt.s32.totalorder %s2640_s14, 3  ;;  %s2694_s18 = smov [#allocation8]  }
  0x10   : > { %s278_s19 = sshll.u32 %s2694_s18, 4  ;;  %s2695_s21 = smov [#allocation11]   ;;  %s279_s19 = int_to_ptr.vmem [resolvable:$true] %s278_s19 }
  0x11   : > { %p2798_p3 = pnand %p1953_p0, %p266_p2  ;;  %s304_s22 = sshll.u32 %s2695_s21, 4  ;;  %s305_s22 = int_to_ptr.vmem [resolvable:$true] %s304_s22 }
  0x12   : > { %s2696_s23 = smov [#allocation10]   ;;  %s2379_s25 = scalar_lea.vmem %s279_s19, 512 }
  0x13   : > { %p2148_p4 = pneg %p2798_p3  ;;  %s291_s24 = sshll.u32 %s2696_s23, 4  ;;  %s292_s24 = int_to_ptr.vmem [resolvable:$true] %s291_s24 }
  0x14   : > { %p2380_p8 = scmp.ne.s32.totalorder %s279_s19, %s2379_s25  ;;  %p2387_p11 = scmp.lt.s32.totalorder %s279_s19, %s279_s19 }
  0x15   : > { %p2807_p6 = pnand %p2148_p4, %p2793_p1  ;;  %p2388_p12 = scmp.lt.s32.totalorder %s2379_s25, %s2379_s25 }
  0x17   : > { %p2370_p7 = pneg %p2807_p6  ;;  %p2389_p13 = por %p2388_p12, %p2387_p11 }
  0x19   : > { %p2382_p9 = pnand %p2380_p8, %p2370_p7 }
  0x1b   : > { %p2383_p10 = pneg %p2382_p9 }
  0x1d   : > { %p2390_p0 = pnand %p2389_p13, %p2383_p10 }
  0x1f   : > { %2393 = shalt.err (!%p2390_p0)
}
  0x20   : > { %s2697_s26 = smov 128   ;;  %s2698_s27 = smov 8  }
  0x21   : > { %s3272_s1 = sld [smem:[#allocation21_spill]]  ;;  %s2405_s18 = scalar_lea.vmem %s305_s22, 512 }
  0x22   : > { %p2406_p2 = scmp.ne.s32.totalorder %s305_s22, %s2405_s18  ;;  %p2413_p9 = scmp.lt.s32.totalorder %s305_s22, %s305_s22 }
  0x23   : > { %p2414_p10 = scmp.lt.s32.totalorder %s2405_s18, %s2405_s18 }
  0x24   : > { %p2408_p4 = pnand %p2406_p2, %p2370_p7 }
  0x25   : > { %p2415_p11 = por %p2414_p10, %p2413_p9 }
  0x26   : > { %p2409_p8 = pneg %p2408_p4 }
  0x27   : > { %2151 = dma.hbm_to_vmem [thread:$0]  (!%p2807_p6), %s3272_s1, 512, %s279_s19, [#allocation9], %s2697_s26, %s2697_s26, %s2698_s27  }
  0x28   : > { %p2416_p12 = pnand %p2415_p11, %p2409_p8 }
  0x2a   : > { %2419 = shalt.err (!%p2416_p12)
}
  0x2b   : > { %s3273_s3 = sld [smem:[#allocation23_spill]]  ;;  %s2431_s19 = scalar_lea.vmem %s292_s24, 512 }
  0x2c   : > { %p2432_p13 = scmp.ne.s32.totalorder %s292_s24, %s2431_s19  ;;  %p2439_p4 = scmp.lt.s32.totalorder %s292_s24, %s292_s24 }
  0x2d   : > { %p2440_p8 = scmp.lt.s32.totalorder %s2431_s19, %s2431_s19 }
  0x2e   : > { %p2434_p0 = pnand %p2432_p13, %p2370_p7 }
  0x2f   : > { %p2441_p9 = por %p2440_p8, %p2439_p4 }
  0x30   : > { %p2435_p2 = pneg %p2434_p0 }
  0x31   : > { %2157 = dma.hbm_to_vmem [thread:$0]  (!%p2807_p6), %s3273_s3, 512, %s305_s22, [#allocation12], %s2697_s26, %s2697_s26, %s2698_s27  }
  0x32   : > { %p2442_p10 = pnand %p2441_p9, %p2435_p2 }
  0x34   : > { %2445 = shalt.err (!%p2442_p10)
}
  0x35   : > { %s3274_s2 = sld [smem:[#allocation22_spill]]  ;;  %s2699_s22 = smov [#allocation13]  }
  0x36   : > { %s317_s29 = sshll.u32 %s2699_s22, 4  ;;  %s318_s29 = int_to_ptr.vmem [resolvable:$true] %s317_s29 }
  0x37   : > { %s2457_s18 = scalar_lea.vmem %s318_s29, 512  ;;  %p2465_p0 = scmp.lt.s32.totalorder %s318_s29, %s318_s29 }
  0x38   : > { %p2458_p11 = scmp.ne.s32.totalorder %s318_s29, %s2457_s18  ;;  %p2466_p2 = scmp.lt.s32.totalorder %s2457_s18, %s2457_s18 }
  0x3a   : > { %p2460_p12 = pnand %p2458_p11, %p2370_p7  ;;  %p2467_p4 = por %p2466_p2, %p2465_p0 }
  0x3b   : > { %2154 = dma.hbm_to_vmem [thread:$0]  (!%p2807_p6), %s3274_s2, 512, %s292_s24, [#allocation9], %s2697_s26, %s2697_s26, %s2698_s27  }
  0x3c   : > { %p2461_p13 = pneg %p2460_p12 }
  0x3e   : > { %p2468_p8 = pnand %p2467_p4, %p2461_p13 }
  0x40   : > { %2471 = shalt.err (!%p2468_p8)
}
  0x41   : > { %s3275_s4 = sld [smem:[#allocation24_spill]]  ;;  %s1952_s20 = sadd.s32 4294967294, %s2640_s14  }
  0x42   : > { %s39_s23 = sadd.s32 1, %s2636_s13  ;;  %s46_s19 = sadd.s32 1, %s2628_s11 }
  0x43   : > { %p41_p7 = scmp.ge.s32.totalorder %s39_s23, 2  ;;  %p53_p9 = scmp.ne.s32.totalorder %s2628_s11, %s2624_s10 }
  0x44   : > { %p54_p10 = scmp.eq.s32.totalorder %s2640_s14, 0  ;;  %p59_p12 = scmp.ne.s32.totalorder %s2624_s10, %s2620_s30 }
  0x45   : > { %s3303_s23 = smov (%p41_p7, %s39_s23), 0  ;;  %p259_p4 = scmp.eq.s32.totalorder %s1952_s20, 1 }
  0x46   : > { %3276 = sst [smem:[#allocation20_spill]] %s3303_s23  ;;  %p2865_p11 = por %p54_p10, %p53_p9 }
  0x47   : > { %2160 = dma.hbm_to_vmem [thread:$0]  (!%p2807_p6), %s3275_s4, 512, %s318_s29, [#allocation12], %s2697_s26, %s2697_s26, %s2698_s27  }
  0x48   : > { %s43_s26 = ssub.s32 %s2636_s13, %s3303_s23  ;;  %p253_p6 = scmp.eq.s32.totalorder %s1951_s15, 1 }
  0x49   : > { %p44_p13 = scmp.eq.s32.totalorder %s43_s26, 0  ;;  %p2877_p0 = por %p2793_p1, %p59_p12 }
  0x4a   : > { %p2881_p2 = por %p253_p6, %p53_p9  ;;  %p2888_p8 = por %p259_p4, %p59_p12 }
  0x4b   : > { %s2886_s22 = scalar_select %p44_p13, %s2628_s11, %s46_s19  }
  0x4c   : > { %s3280_s29 = scalar_select %p2888_p8, 1, 0 }
  0x4d   : > { %p2173_p7 = scmp.lt.s32.totalorder %s2640_s14, 2  ;;  %s343_s18 = sand.u32 1, %s2628_s11  }
  0x4e   : > { %s1960_s15 = sshll.u32 %s2636_s13, 7  ;;  %s1959_s24 = sshll.u32 %s343_s18, 3 }
  0x4f   : > { %s352_s1 = scalar_lea.hbm %s3252_s0, %s1960_s15  ;;  %s347_s2 = scalar_lea.vmem [#allocation5], %s1959_s24 }
  0x50   : > { %s354_s3 = sshll.u32 %s347_s2, 4  ;;  %p2900_p9 = pnand %p2173_p7, %p2865_p11  ;;  %s355_s3 = int_to_ptr.vmem [resolvable:$true] %s354_s3 }
  0x51   : > { %s344_s20 = scalar_lea.sflag [#allocation6], %s343_s18  ;;  %s2485_s19 = scalar_lea.vmem %s355_s3, 128 }
  0x52   : > { %p2474_p10 = pneg %p2900_p9  ;;  %p2486_p12 = scmp.ne.s32.totalorder %s355_s3, %s2485_s19 }
  0x53   : > { %s2700_s23 = smov [#allocation5]  }
  0x54   : > { %p2488_p6 = pnand %p2486_p12, %p2474_p10  ;;  %s2490_s13 = sshll.u32 %s2700_s23, 4  ;;  %s2491_s13 = int_to_ptr.vmem [resolvable:$false] %s2490_s13 }
  0x55   : > { %s2492_s15 = scalar_lea.vmem %s2491_s13, 256  ;;  %p2493_p4 = scmp.lt.s32.totalorder %s355_s3, %s2491_s13 }
  0x56   : > { %p2489_p13 = pneg %p2488_p6  ;;  %p2494_p5 = scmp.lt.s32.totalorder %s2492_s15, %s2485_s19 }
  0x58   : > { %p2495_p8 = por %p2494_p5, %p2493_p4 }
  0x5a   : > { %p2496_p11 = pnand %p2495_p8, %p2489_p13 }
  0x5c   : > { %2499 = shalt.err (!%p2496_p11)
}
  0x5d   : > { %2164 = dma.hbm_to_vmem [thread:$0]  (!%p2900_p9), %s352_s1, 128, %s355_s3, %s344_s20  }
  0x5e   : > { %363 = sbr.rel (%p2798_p3) target bundleno = 1224 (0x4c8), region = 56  ;;  %s2911_s2 = sand.u32 (!%p2798_p3), 1, %s2624_s10  }
  0x5f   : > { %s1962_s23 = sshll.u32 (!%p2798_p3), %s2911_s2, 3  ;;  %s366_s25 = scalar_lea.sflag (!%p2798_p3), [#allocation6], %s2911_s2 }
  0x60   : > { %s2917_s13 = scalar_lea.vmem (!%p2798_p3), [#allocation5], %s1962_s23 }
  0x63   : > { %2603 = dma.done.wait (%p2877_p0), %s366_s25, 128  }
  0x64   : > { %2605 = vsyncadd (%p2877_p0), %s366_s25, 4294967168 }
  0x65   : > { %2607 = dma.done.wait (%p2793_p1), [#allocation9], 1024  }
  0x66   : > { %2609 = vsyncadd (%p2793_p1), [#allocation9], 4294966272 }
  0x67   : > { %2611 = dma.done.wait (%p2793_p1), [#allocation12], 1024  }
  0x68   : > { %2613 = vsyncadd (%p2793_p1), [#allocation12], 4294966272  ;;  %v2701_v0 = vmov 0.0   ;;  %vm2702_vm0 = vmmov 0   ;;  %v428_v1 = vld [vmem:[#allocation10 + $0x18] sm:$0xff]  ;;  %v427_v2 = vld [vmem:[#allocation10 + $0x10] sm:$0xff]  ;;  %v736_v24 = vlaneseq }
  0x69   : > { %2035 = vmatprep.subr.mxu0 %v2701_v0  ;;  %2046 = vmatprep.subr.mxu1 %v2701_v0  ;;  %v513_v3 = vld [vmem:[#allocation11 + $0x18] sm:$0xff]  ;;  %v512_v4 = vld [vmem:[#allocation11 + $0x10] sm:$0xff]  ;;  %v426_v5 = vld [vmem:[#allocation10 + $0x8] sm:$0xff]  ;;  %vm436_vm1 = vcmask 261120   ;;  %vm591_vm2 = vcmask 64512   ;;  %s2703_s17 = smov 120  }
  0x6a   : > { %2043 = vmatprep.mubr.msk.f32.mxu0 %vm2702_vm0, %v2701_v0  ;;  %2054 = vmatprep.mubr.msk.f32.mxu1 %vm2702_vm0, %v2701_v0  ;;  %v511_v6 = vld [vmem:[#allocation11 + $0x8] sm:$0xff]  ;;  %v425_v7 = vld [vmem:[#allocation10] sm:$0xff]  ;;  %v424_v9 = vld [vmem:[%s2917_s13] sm:$0xff]  ;;  %v2964_v27 = vshrl.u32 %v736_v24, 7  ;;  %v2966_v28 = vand.u32 127, %v736_v24  ;;  %s2704_s24 = smov 104  }
  0x6b   : > { %2036 = vmatpush3.msra.mxu0 %v428_v1  ;;  %2047 = vmatpush3.msra.mxu1 %v513_v3  ;;  %v510_v8 = vld [vmem:[#allocation11] sm:$0xff]  ;;  %v632_v10 = vld [vmem:[#allocation8 + $0x18] sm:$0xff]  ;;  %v631_v11 = vld [vmem:[#allocation8 + $0x10] sm:$0xff]  ;;  %s2705_s21 = smov 112   ;;  %s2988_s26 = scalar_lea.vmem [#allocation14], %s1962_s23  ;;  %v2990_v42 = vmov 0.0  }
  0x6c   : > { %2037 = vmatprep.subr.mxu0 %v2701_v0  ;;  %2048 = vmatprep.subr.mxu1 %v2701_v0  ;;  %v630_v12 = vld [vmem:[#allocation8 + $0x8] sm:$0xff]  ;;  %v629_v13 = vld [vmem:[#allocation8] sm:$0xff]  ;;  %v1968_v14 = vld [vmem:[%s3258_s6] ss:$0 sm:$0xff]  ;;  %v2992_v43 = vmov 0.0   ;;  %v2994_v44 = vmov 0.0  }
  0x6d   : > { %2038 = vmatpush3.msra.mxu0 %v427_v2  ;;  %2049 = vmatpush3.msra.mxu1 %v512_v4  ;;  %v1970_v15 = vld [vmem:[%s3259_s7] ss:$0 sm:$0xff]  ;;  %v2996_v45 = vmov 0.0   ;;  %v2998_v46 = vmov 0.0   ;;  %v3000_v47 = vmov 0.0   ;;  %v3002_v48 = vmov 0.0  }
  0x6e   : > { %2039 = vmatprep.subr.mxu0 %v2701_v0  ;;  %2050 = vmatprep.subr.mxu1 %v2701_v0  ;;  %v1972_v22 = vld [vmem:[%s3257_s5] ss:$0 sm:$0xff]  ;;  %v3004_v49 = vmov 0.0   ;;  %v3006_v50 = vmov -inf   ;;  %v3008_v51 = vmov -inf   ;;  %v3010_v52 = vmov -inf  }
  0x6f   : > { %2040 = vmatpush3.msra.mxu0 %v426_v5  ;;  %2051 = vmatpush3.msra.mxu1 %v511_v6  ;;  %v3012_v53 = vmov -inf   ;;  %s3014_s20 = smov 0  }
  0x70   : > { %2041 = vmatprep.subr.mxu0 %v2701_v0  ;;  %2052 = vmatprep.subr.mxu1 %v2701_v0 }
  0x71   : > { %2042 = vmatpush3.msra.mxu0 %v425_v7  ;;  %2053 = vmatpush3.msra.mxu1 %v510_v8 }
  0x72   : > { %2044 = vmatmul.mubr.msk.f32.vlgmr.msra.gmra.mxu0 %vm436_vm1, %v424_v9  ;;  %2057 = vmatprep.subr.mxu0 %v2701_v0 }
  0x73   : > { %2058 = vmatpush3.msra.mxu0 %v632_v10  ;;  %2055 = vmatmul.mubr.msk.f32.vlgmr.msra.gmra.mxu1 %vm436_vm1, %v424_v9 }
  0x74   : > { %2059 = vmatprep.subr.mxu0 %v2701_v0  ;;  %2065 = vmatprep.mubr.msk.f32.mxu0 %vm2702_vm0, %v2701_v0 }
  0x75   : > { %2060 = vmatpush3.msra.mxu0 %v631_v11 }
  0x76   : > { %2061 = vmatprep.subr.mxu0 %v2701_v0 }
  0x77   : > { %2062 = vmatpush3.msra.mxu0 %v630_v12 }
  0x78   : > { %2063 = vmatprep.subr.mxu0 %v2701_v0 }
  0x79   : > { %2064 = vmatpush3.msra.mxu0 %v629_v13 }
  0x7a   : > { %2066 = vmatmul.mubr.msk.f32.vlgmr.msra.gmra.mxu0 %vm436_vm1, %v424_v9 }
 0x132   : > { %v506_v16 = vpop.f32.mrf.mxu0 }
 0x133   : > { %v507_v17 = vadd.f32 %v1968_v14, %v506_v16  ;;  %v587_v18 = vpop.f32.mrf.mxu1 }
 0x134   : > { %v2045_v19 = vpop.f32.mrf.mxu0  ;;  %v588_v20 = vadd.f32 %v1970_v15, %v587_v18 }
 0x135   : > { %592 = vst.msk [vmem:[#allocation2] sm:$0xff] %vm591_vm2, %v507_v17  ;;  %v2056_v21 = vpop.f32.mrf.mxu1  ;;  %595 = vrot.lane.b32.xlu1 %v507_v17, %s2703_s17 }
 0x136   : > { %593 = vst.msk [vmem:[#allocation3] sm:$0xff] %vm591_vm2, %v588_v20  ;;  %601 = vrot.lane.b32.xlu0 %v588_v20, %s2703_s17 }
 0x13a   : > { %v710_v23 = vpop.f32.mrf.mxu0 }
 0x13b   : > { %v711_v25 = vadd.f32 %v1972_v22, %v710_v23 }
 0x13c   : > { %v2067_v26 = vpop.f32.mrf.mxu0 }
 0x13d   : > { %715 = vst.msk [vmem:[#allocation4] sm:$0xff] %vm591_vm2, %v711_v25  ;;  %727 = vrot.lane.b32.xlu1 %v711_v25, %s2704_s24  ;;  %717 = vrot.lane.b32.xlu0 %v711_v25, %s2703_s17 }
 0x141   : > { %606 = vrot.lane.b32.xlu1 %v507_v17, %s2705_s21  ;;  %722 = vrot.lane.b32.xlu0 %v711_v25, %s2705_s21 }
 0x144   : > { %v2969_v29 = vld [vmem:[#allocation4] sm:$0xff] }
 0x145   : > { %616 = vrot.lane.b32.xlu1 %v507_v17, %s2704_s24  ;;  %611 = vrot.lane.b32.xlu0 %v588_v20, %s2705_s21 }
 0x149   : > { %621 = vrot.lane.b32.xlu0 %v588_v20, %s2704_s24 }
 0x1a7   : > { %v596_v30 = vpop.permute.xlu1 %595 }
 0x1a8   : > { %599 = vst.msk [vmem:[#allocation2 + $0x8] sm:$0xff] %vm591_vm2, %v596_v30  ;;  %v602_v31 = vpop.permute.xlu0 %601 }
 0x1a9   : > { %605 = vst.msk [vmem:[#allocation3 + $0x8] sm:$0xff] %vm591_vm2, %v602_v31 }
 0x1af   : > { %v728_v32 = vpop.permute.xlu1 %727  ;;  %v718_v33 = vpop.permute.xlu0 %717 }
 0x1b0   : > { %731 = vst.msk [vmem:[#allocation4 + $0x18] sm:$0xff] %vm591_vm2, %v728_v32  ;;  %721 = vst.msk [vmem:[#allocation4 + $0x8] sm:$0xff] %vm591_vm2, %v718_v33 }
 0x1b3   : > { %v607_v34 = vpop.permute.xlu1 %606  ;;  %v723_v35 = vpop.permute.xlu0 %722 }
 0x1b4   : > { %610 = vst.msk [vmem:[#allocation2 + $0x10] sm:$0xff] %vm591_vm2, %v607_v34  ;;  %726 = vst.msk [vmem:[#allocation4 + $0x10] sm:$0xff] %vm591_vm2, %v723_v35 }
 0x1b7   : > { %v2977_v36 = vld [vmem:[#allocation4 + $0x18] sm:$0xff]  ;;  %v2979_v37 = vld [vmem:[#allocation4 + $0x8] sm:$0xff]  ;;  %v617_v38 = vpop.permute.xlu1 %616  ;;  %v612_v39 = vpop.permute.xlu0 %611 }
 0x1b8   : > { %620 = vst.msk [vmem:[#allocation2 + $0x18] sm:$0xff] %vm591_vm2, %v617_v38  ;;  %615 = vst.msk [vmem:[#allocation3 + $0x10] sm:$0xff] %vm591_vm2, %v612_v39 }
 0x1bb   : > { %v2983_v40 = vld [vmem:[#allocation4 + $0x10] sm:$0xff]  ;;  %v622_v41 = vpop.permute.xlu0 %621 }
 0x1bc   : > { %625 = vst.msk [vmem:[#allocation3 + $0x18] sm:$0xff] %vm591_vm2, %v622_v41 }
 0x1bd LB: >> { %v2706_v54 = vmov 0.0   ;;  %vm2707_vm3 = vmmov 0   ;;  %s3059_s19 = sshll.u32 %s2692_s20, 3  ;;  %s745_s20 = sadd.s32 1, %s2692_s20   ;;  %s2692_s20 = sphi %s3014_s20, %s745_s20   ;;  %v2688_v53 = vphi %v3012_v53, %v3294_v53   ;;  %v2684_v52 = vphi %v3010_v52, %v3293_v52   ;;  %v2680_v51 = vphi %v3008_v51, %v3292_v51   ;;  %v2676_v50 = vphi %v3006_v50, %v3291_v50   ;;  %v2672_v49 = vphi %v3004_v49, %v3290_v49   ;;  %v2668_v48 = vphi %v3002_v48, %v3289_v48   ;;  %v2664_v47 = vphi %v3000_v47, %v3288_v47   ;;  %v2660_v46 = vphi %v2998_v46, %v3287_v46   ;;  %v2656_v45 = vphi %v2996_v45, %v3286_v45   ;;  %v2652_v44 = vphi %v2994_v44, %v3285_v44   ;;  %v2648_v43 = vphi %v2992_v43, %v3284_v43   ;;  %v2644_v42 = vphi %v2990_v42, %v3283_v42  }
 0x1be   : >> { %2068 = vmatprep.subr.mxu0 %v2706_v54  ;;  %2070 = vmatprep.mubr.msk.f32.mxu0 %vm2707_vm3, %v2706_v54  ;;  %s761_s15 = scalar_lea.vmem [#allocation2], %s3059_s19  ;;  %v1075_v59 = vstv %s3059_s19  ;;  %s3097_s23 = scalar_lea.vmem [#allocation3], %s3059_s19 }
 0x1bf   : >> { %2073 = vmatprep.subr.mxu1 %v2706_v54  ;;  %2075 = vmatprep.mubr.msk.f32.mxu1 %vm2707_vm3, %v2706_v54  ;;  %v762_v55 = vld [vmem:[%s761_s15] sm:$0xff]  ;;  %v763_v56 = vld [vmem:[%s761_s15 + $0x8] sm:$0xff]  ;;  %v764_v57 = vld [vmem:[%s761_s15 + $0x10] sm:$0xff]  ;;  %v1076_v60 = vadd.s32 %v1075_v59, %v2966_v28  ;;  %p3150_p1 = scmp.ge.s32.totalorder %s745_s20, 1 }
 0x1c0   : >> { %2069 = vmatpush3.xpose.msk.msra.mxu0 %vm591_vm2, %v762_v55  ;;  %2074 = vmatpush3.xpose.msk.msra.mxu1 %vm591_vm2, %v763_v56  ;;  %v765_v58 = vld [vmem:[%s761_s15 + $0x18] sm:$0xff]  ;;  %s1993_s3 = sshll.u32 (%p3150_p1), %s2632_s12, 7  ;;  %s1787_s4 = sshll.u32 (%p3150_p1), %s2988_s26, 4  ;;  %s1788_s4 = int_to_ptr.vmem [resolvable:$true] %s1787_s4 }
 0x1c1   : >> { %2078 = vmatprep.subr.mxu0 %v2706_v54  ;;  %2083 = vmatprep.subr.mxu1 %v2706_v54  ;;  %vm1077_vm4 = vcmp.gt.s32.totalorder %v1076_v60, %v2964_v27  ;;  %s1785_s27 = scalar_lea.hbm (%p3150_p1), %s3261_s9, %s1993_s3  ;;  %s1773_s18 = scalar_lea.sflag (%p3150_p1), [#allocation7], %s2911_s2 }
 0x1c2   : > { %s2500_s24 = scalar_lea.vmem (%p3150_p1), %s1788_s4, 128  ;;  %s2708_s21 = smov (%p3150_p1), [#allocation14]  }
 0x1c3   : >> { %2071 = vmatmul.mubr.msk.f32.vlgmr.msra.gmra.mxu0 %vm591_vm2, %v2969_v29  ;;  %2076 = vmatmul.mubr.msk.f32.vlgmr.msra.gmra.mxu1 %vm591_vm2, %v2979_v37  ;;  %v767_v14 = vld [vmem:[%s3097_s23] sm:$0xff]  ;;  %v768_v15 = vld [vmem:[%s3097_s23 + $0x8] sm:$0xff]  ;;  %v770_v59 = vld [vmem:[%s3097_s23 + $0x18] sm:$0xff]  ;;  %p2501_p3 = scmp.ne.s32.totalorder (%p3150_p1), %s1788_s4, %s2500_s24  ;;  %s2504_s20 = sshll.u32 (%p3150_p1), %s2708_s21, 4  ;;  %s2505_s20 = int_to_ptr.vmem [resolvable:$false] %s2504_s20 }
 0x1c4   : >> { %2079 = vmatpush3.xpose.msk.msra.mxu0 %vm591_vm2, %v764_v57  ;;  %2080 = vmatprep.mubr.msk.f32.mxu0 %vm2707_vm3, %v2706_v54  ;;  %s2506_s12 = scalar_lea.vmem (%p3150_p1), %s2505_s20, 256  ;;  %p2507_p8 = scmp.lt.s32.totalorder (%p3150_p1), %s1788_s4, %s2505_s20 }
 0x1c5   : >> { %2084 = vmatpush3.xpose.msk.msra.mxu1 %vm591_vm2, %v765_v58  ;;  %2085 = vmatprep.mubr.msk.f32.mxu1 %vm2707_vm3, %v2706_v54  ;;  %p2502_p5 = pnand (%p3150_p1), %p2501_p3, %p2881_p2  ;;  %p2508_p7 = scmp.lt.s32.totalorder (%p3150_p1), %s2506_s12, %s2500_s24 }
 0x1c6   : >> { %2088 = vmatprep.subr.mxu0 %v2706_v54  ;;  %2093 = vmatprep.subr.mxu1 %v2706_v54 }
 0x1c7   : >> { %2081 = vmatmul.mubr.msk.f32.vlgmr.msra.gmra.mxu0 %vm591_vm2, %v2983_v40  ;;  %p2503_p0 = pneg (%p3150_p1), %p2502_p5  ;;  %p2509_p9 = por (%p3150_p1), %p2508_p7, %p2507_p8 }
 0x1c8   : >> { %2086 = vmatmul.mubr.msk.f32.vlgmr.msra.gmra.mxu1 %vm591_vm2, %v2977_v36  ;;  %2090 = vmatprep.mubr.msk.f32.mxu0 %vm2707_vm3, %v2706_v54  ;;  %v1462_v36 = vld [vmem:[#allocation13 + $0x10] sm:$0xff] (%p3150_p1) }
 0x1c9   : >> { %2095 = vmatprep.mubr.msk.f32.mxu1 %vm2707_vm3, %v2706_v54  ;;  %2089 = vmatpush3.msra.mxu0 %v767_v14  ;;  %p2510_p10 = pnand (%p3150_p1), %p2509_p9, %p2503_p0 }
 0x1ca   : >> { %2098 = vmatprep.subr.mxu0 %v2706_v54  ;;  %2094 = vmatpush3.msra.mxu1 %v768_v15 }
 0x1cb   : >> { %2103 = vmatprep.subr.mxu1 %v2706_v54 }
 0x283   : >> { %v843_v61 = vpop.f32.mrf.mxu0  ;;  %v919_v62 = vpop.f32.mrf.mxu1 }
 0x284   : >> { %v1080_v63 = vsel %vm1077_vm4, %v843_v61, -inf  ;;  %v1081_v1 = vsel %vm1077_vm4, %v919_v62, -inf }
 0x285   : >> { %v2072_v2 = vpop.f32.mrf.mxu0  ;;  %v1084_v3 = vsel %vm591_vm2, %v1080_v63, -inf  ;;  %v2077_v4 = vpop.f32.mrf.mxu1  ;;  %v1087_v6 = vsel %vm591_vm2, %v1081_v1, -inf }
 0x286   : >> { %1085 = vmax.xlane.f32.xlu0 %v1084_v3 }
 0x287   : >> { %v995_v5 = vpop.f32.mrf.mxu0 }
 0x288   : >> { %v1082_v7 = vsel %vm1077_vm4, %v995_v5, -inf  ;;  %v1071_v8 = vpop.f32.mrf.mxu1 }
 0x289   : >> { %v2082_v9 = vpop.f32.mrf.mxu0  ;;  %v1083_v10 = vsel %vm1077_vm4, %v1071_v8, -inf  ;;  %v1090_v11 = vsel %vm591_vm2, %v1082_v7, -inf }
 0x28a   : >> { %1088 = vmax.xlane.f32.xlu0 %v1087_v6  ;;  %1091 = vmax.xlane.f32.xlu1 %v1090_v11  ;;  %v2087_v12 = vpop.f32.mrf.mxu1  ;;  %v1093_v13 = vsel %vm591_vm2, %v1083_v10, -inf }
 0x28e   : >> { %1094 = vmax.xlane.f32.xlu1 %v1093_v13 }
 0x30f   : >> { %v1086_v16 = vpop.xlane.xlu0 %1085 }
 0x310   : >> { %v3104_v17 = vmax.f32 %v2688_v53, %v1086_v16  }
 0x312   : >> { %vm1100_vm5 = vcmp.eq.f32.partialorder %v3104_v17, -inf }
 0x313   : >> { %v1104_v18 = vsel %vm1100_vm5, 0.0, %v3104_v17  ;;  %v1089_v19 = vpop.xlane.xlu0 %1088  ;;  %v1092_v20 = vpop.xlane.xlu1 %1091 }
 0x314   : >> { %v1108_v21 = vsub.f32 %v2688_v53, %v1104_v18  ;;  %v1120_v22 = vsub.f32 %v1080_v63, %v1104_v18  ;;  %v3110_v23 = vmax.f32 %v2684_v52, %v1089_v19   ;;  %v3113_v24 = vmax.f32 %v2680_v51, %v1092_v20  }
 0x316   : >> { %v1124_v25 = vmul.f32 1.442695, %v1120_v22  ;;  %vm1101_vm6 = vcmp.eq.f32.partialorder %v3110_v23, -inf  ;;  %vm1102_vm7 = vcmp.eq.f32.partialorder %v3113_v24, -inf  ;;  %v1112_v2 = vmul.f32 1.442695, %v1108_v21 }
 0x317   : >> { %v1105_v26 = vsel %vm1101_vm6, 0.0, %v3110_v23  ;;  %v1106_v30 = vsel %vm1102_vm7, 0.0, %v3113_v24  ;;  %v1095_v31 = vpop.xlane.xlu1 %1094 }
 0x318   : >> { %v1109_v32 = vsub.f32 %v2684_v52, %v1105_v26  ;;  %v1121_v33 = vsub.f32 %v1081_v1, %v1105_v26  ;;  %v1110_v34 = vsub.f32 %v2680_v51, %v1106_v30  ;;  %2344 = vpow2.f32 %v1124_v25  ;;  %v769_v51 = vld [vmem:[%s3097_s23 + $0x10] sm:$0xff] }
 0x319   : >> { %v1122_v35 = vsub.f32 %v1082_v7, %v1106_v30  ;;  %v3122_v38 = vmax.f32 %v2676_v50, %v1095_v31  }
 0x31a   : >> { %v1126_v39 = vmul.f32 1.442695, %v1121_v33  ;;  %v1114_v3 = vmul.f32 1.442695, %v1109_v32  ;;  %v1116_v4 = vmul.f32 1.442695, %v1110_v34 }
 0x31b   : >> { %v1128_v41 = vmul.f32 1.442695, %v1122_v35  ;;  %vm1103_vm8 = vcmp.eq.f32.partialorder %v3122_v38, -inf }
 0x31c   : >> { %v1107_v53 = vsel %vm1103_vm8, 0.0, %v3122_v38  ;;  %2346 = vpow2.f32 %v1126_v39 }
 0x31d   : >> { %v1111_v55 = vsub.f32 %v2676_v50, %v1107_v53  ;;  %v1123_v52 = vsub.f32 %v1083_v10, %v1107_v53  ;;  %2348 = vpow2.f32 %v1128_v41 }
 0x31f   : >> { %v1130_v56 = vmul.f32 1.442695, %v1123_v52  ;;  %v1118_v5 = vmul.f32 1.442695, %v1111_v55  ;;  %v3293_v52 = vmov %v3110_v23  ;;  %v1460_v55 = vld [vmem:[#allocation13] sm:$0xff] (%p3150_p1) }
 0x321   : >> { %2350 = vpow2.f32 %v1130_v56  ;;  %v1461_v56 = vld [vmem:[#allocation13 + $0x8] sm:$0xff] (%p3150_p1) }
 0x322   : >> { %2352 = vpow2.f32 %v1112_v2 }
 0x323   : >> { %2354 = vpow2.f32 %v1114_v3 }
 0x324   : >> { %2356 = vpow2.f32 %v1116_v4 }
 0x325   : >> { %v2345_v57 = vpop.eup %2344  ;;  %2358 = vpow2.f32 %v1118_v5 }
 0x326   : >> { %2091 = vmatmul.mubr.msk.f32.vlgmr.msra.gmra.mxu0 %vm591_vm2, %v2345_v57  ;;  %v1136_v58 = vsel %vm591_vm2, %v2345_v57, 0.0 }
 0x327   : >> { %1137 = vadd.xlane.f32.xlu0 %v1136_v58  ;;  %2099 = vmatpush3.msra.mxu0 %v769_v51  ;;  %v3292_v51 = vmov %v3113_v24 }
 0x328   : >> { %2100 = vmatprep.mubr.msk.f32.mxu0 %vm2707_vm3, %v2706_v54  ;;  %2108 = vmatprep.subr.mxu0 (%p3150_p1), %v2701_v0 }
 0x329   : >> { %v2347_v60 = vpop.eup %2346 }
 0x32a   : >> { %2096 = vmatmul.mubr.msk.f32.vlgmr.msra.gmra.mxu1 %vm591_vm2, %v2347_v60  ;;  %v1139_v50 = vsel %vm591_vm2, %v2347_v60, 0.0  ;;  %v2349_v61 = vpop.eup %2348 }
 0x32b   : >> { %2104 = vmatpush3.msra.mxu1 %v770_v59  ;;  %1140 = vadd.xlane.f32.xlu1 %v1139_v50  ;;  %v1142_v62 = vsel %vm591_vm2, %v2349_v61, 0.0  ;;  %v3291_v50 = vmov %v3122_v38 }
 0x32c   : >> { %2101 = vmatmul.mubr.msk.f32.vlgmr.msra.gmra.mxu0 %vm591_vm2, %v2349_v61  ;;  %2105 = vmatprep.mubr.msk.f32.mxu1 %vm2707_vm3, %v2706_v54 }
 0x32d   : >> { %1143 = vadd.xlane.f32.xlu0 %v1142_v62  ;;  %2113 = vmatprep.subr.mxu1 (%p3150_p1), %v2701_v0  ;;  %v1991_v62 = vld [vmem:[%s3260_s8] ss:$0 sm:$0xff] (%p3150_p1) }
 0x32e   : >> { %v2351_v63 = vpop.eup %2350  ;;  %2109 = vmatpush3.msra.mxu0 (%p3150_p1), %v1460_v55  ;;  %2110 = vmatprep.mubr.msk.f32.mxu0 (%p3150_p1), %vm2702_vm0, %v2701_v0 }
 0x32f   : >> { %2106 = vmatmul.mubr.msk.f32.vlgmr.msra.gmra.mxu1 %vm591_vm2, %v2351_v63  ;;  %v1145_v1 = vsel %vm591_vm2, %v2351_v63, 0.0  ;;  %v2353_v6 = vpop.eup %2352  ;;  %2118 = vmatprep.subr.mxu0 (%p3150_p1), %v2701_v0 }
 0x330   : >> { %1146 = vadd.xlane.f32.xlu1 %v1145_v1  ;;  %v1132_v7 = vmul.f32 %v2672_v49, %v2353_v6  ;;  %v2355_v8 = vpop.eup %2354  ;;  %v1152_v22 = vmul.f32 %v2656_v45, %v2353_v6  ;;  %2114 = vmatpush3.msra.mxu1 (%p3150_p1), %v1461_v56 }
 0x331   : >> { %v2357_v10 = vpop.eup %2356  ;;  %v1133_v11 = vmul.f32 %v2668_v48, %v2355_v8  ;;  %v1153_v30 = vmul.f32 %v2652_v44, %v2355_v8  ;;  %2115 = vmatprep.mubr.msk.f32.mxu1 (%p3150_p1), %vm2702_vm0, %v2701_v0  ;;  %2123 = vmatprep.subr.mxu1 (%p3150_p1), %v2701_v0 }
 0x332   : >> { %v2359_v13 = vpop.eup %2358  ;;  %v1134_v15 = vmul.f32 %v2664_v47, %v2357_v10  ;;  %v1154_v48 = vmul.f32 %v2648_v43, %v2357_v10 }
 0x333   : >> { %v1135_v19 = vmul.f32 %v2660_v46, %v2359_v13  ;;  %v1155_v39 = vmul.f32 %v2644_v42, %v2359_v13 }
 0x3b0   : >> { %v1138_v54 = vpop.xlane.xlu0 %1137 }
 0x3b1   : >> { %v1148_v9 = vadd.f32 %v1138_v54, %v1132_v7  }
 0x3b3   : > { %2360 = vrcp.f32 (%p3150_p1), %v1148_v9 }
 0x3b4   : >> { %v1141_v12 = vpop.xlane.xlu1 %1140 }
 0x3b5   : >> { %v1149_v14 = vadd.f32 %v1141_v12, %v1133_v11  }
 0x3b6   : >> { %v1144_v16 = vpop.xlane.xlu0 %1143 }
 0x3b7   : >> { %v1150_v18 = vadd.f32 %v1144_v16, %v1134_v15   ;;  %2362 = vrcp.f32 (%p3150_p1), %v1149_v14 }
 0x3b9   : >> { %v1147_v20 = vpop.xlane.xlu1 %1146  ;;  %2364 = vrcp.f32 (%p3150_p1), %v1150_v18 }
 0x3ba   : >> { %v1151_v21 = vadd.f32 %v1147_v20, %v1135_v19  }
 0x3bc   : > { %2366 = vrcp.f32 (%p3150_p1), %v1151_v21 }
 0x3c0   : > { %v2361_v27 = vpop.eup (%p3150_p1), %2360 }
 0x3c4   : > { %v2363_v28 = vpop.eup (%p3150_p1), %2362 }
 0x3c6   : > { %v2365_v37 = vpop.eup (%p3150_p1), %2364 }
 0x3e6   : >> { %v1225_v49 = vpop.f32.mrf.mxu0 }
 0x3e7   : >> { %v1448_v25 = vadd.f32 %v1225_v49, %v1152_v22   ;;  %v3290_v49 = vmov %v1148_v9 }
 0x3e8   : >> { %v2092_v26 = vpop.f32.mrf.mxu0 }
 0x3e9   : >> { %v3286_v45 = vmov %v1448_v25  ;;  %v1456_v29 = vmul.f32 (%p3150_p1), %v2361_v27, %v1448_v25 }
 0x3ea   : >> { %v1298_v31 = vpop.f32.mrf.mxu1 }
 0x3eb   : >> { %v1449_v32 = vadd.f32 %v1298_v31, %v1153_v30   ;;  %2111 = vmatmul.mubr.msk.f32.vlgmr.msra.gmra.mxu0 (%p3150_p1), %vm591_vm2, %v1456_v29 }
 0x3ec   : >> { %v1371_v33 = vpop.f32.mrf.mxu0  ;;  %v2097_v34 = vpop.f32.mrf.mxu1  ;;  %2119 = vmatpush3.msra.mxu0 (%p3150_p1), %v1462_v36  ;;  %2120 = vmatprep.mubr.msk.f32.mxu0 (%p3150_p1), %vm2702_vm0, %v2701_v0 }
 0x3ed   : >> { %v1450_v35 = vadd.f32 %v1371_v33, %v1154_v48   ;;  %v3285_v44 = vmov %v1449_v32  ;;  %v3289_v48 = vmov %v1149_v14  ;;  %v1457_v40 = vmul.f32 (%p3150_p1), %v2363_v28, %v1449_v32 }
 0x3ee   : >> { %v2102_v47 = vpop.f32.mrf.mxu0  ;;  %747 = sbr.rel (!%p3150_p1) target bundleno = 445 (0x1bd), region = 140 }
 0x3ef   : >> { %v1444_v46 = vpop.f32.mrf.mxu1  ;;  %v3284_v43 = vmov %v1450_v35  ;;  %v3288_v47 = vmov %v1150_v18  ;;  %v1458_v44 = vmul.f32 (%p3150_p1), %v2365_v37, %v1450_v35  ;;  %2116 = vmatmul.mubr.msk.f32.vlgmr.msra.gmra.mxu1 (%p3150_p1), %vm591_vm2, %v1457_v40 }
 0x3f0   : >> { %v1451_v41 = vadd.f32 %v1444_v46, %v1155_v39   ;;  %v3287_v46 = vmov %v1151_v21  ;;  %v2367_v43 = vpop.eup (%p3150_p1), %2366  ;;  %2125 = vmatprep.mubr.msk.f32.mxu1 (%p3150_p1), %vm2702_vm0, %v2701_v0 }
 0x3f1   : >> { %v2107_v53 = vpop.f32.mrf.mxu1  ;;  %2121 = vmatmul.mubr.msk.f32.vlgmr.msra.gmra.mxu0 (%p3150_p1), %vm591_vm2, %v1458_v44 }
 0x3f2   : >> { %v3283_v42 = vmov %v1451_v41  ;;  %v3294_v53 = vmov %v3104_v17  ;;  %v1459_v45 = vmul.f32 (%p3150_p1), %v2367_v43, %v1451_v41 }
 0x3f3   : > { %v1463_v42 = vld [vmem:[#allocation13 + $0x18] sm:$0xff] }
 0x3f4   : > { %2124 = vmatpush3.msra.mxu1 %v1463_v42 }
 0x3f5   : > { %2126 = vmatmul.mubr.msk.f32.vlgmr.msra.gmra.mxu1 %vm591_vm2, %v1459_v45 }
 0x4ab   : > { %v1533_v17 = vpop.f32.mrf.mxu0 }
 0x4ac   : > { %v1756_v23 = vsel %vm436_vm1, %v1533_v17, 0.0 }
 0x4ad   : > { %v2112_v52 = vpop.f32.mrf.mxu0 }
 0x4af   : > { %v1606_v24 = vpop.f32.mrf.mxu1 }
 0x4b0   : > { %v1757_v38 = vsel %vm436_vm1, %v1606_v24, 0.0 }
 0x4b1   : > { %v2117_v51 = vpop.f32.mrf.mxu1  ;;  %v1758_v57 = vadd.f32 %v1757_v38, %v1756_v23  ;;  %v1679_v58 = vpop.f32.mrf.mxu0 }
 0x4b2   : > { %v1759_v0 = vsel %vm436_vm1, %v1679_v58, 0.0 }
 0x4b3   : > { %v1760_v60 = vadd.f32 %v1759_v0, %v1758_v57  ;;  %v2122_v61 = vpop.f32.mrf.mxu0 }
 0x4b5   : > { %v1752_v59 = vpop.f32.mrf.mxu1 }
 0x4b6   : > { %v1761_v50 = vsel %vm436_vm1, %v1752_v59, 0.0 }
 0x4b7   : > { %v2127_v63 = vpop.f32.mrf.mxu1  ;;  %v1762_v1 = vadd.f32 %v1761_v50, %v1760_v60 }
 0x4b9   : > { %v1770_v2 = vadd.f32 %v1991_v62, %v1762_v1 }
 0x4bb   : > { %1771 = vst.msk [vmem:[%s2988_s26] sm:$0xff] %vm436_vm1, %v1770_v2 }
 0x4bc   : > { %2513 = shalt.err (!%p2510_p10)
}
 0x4bd   : > { %s2514_s19 = scalar_lea.hbm %s1785_s27, 128  ;;  %s2518_s15 = scalar_lea.hbm %s3261_s9, 256 }
 0x4be   : > { %p2515_p12 = scmp.ne.s32.totalorder %s1785_s27, %s2514_s19  ;;  %p2519_p4 = scmp.lt.s32.totalorder %s1785_s27, %s3261_s9 }
 0x4bf   : > { %p2520_p11 = scmp.lt.s32.totalorder %s2518_s15, %s2514_s19 }
 0x4c0   : > { %p2516_p6 = pnand %p2515_p12, %p2881_p2 }
 0x4c1   : > { %p2521_p1 = por %p2520_p11, %p2519_p4 }
 0x4c2   : > { %p2517_p13 = pneg %p2516_p6 }
 0x4c4   : > { %p2522_p3 = pnand %p2521_p1, %p2517_p13 }
 0x4c6   : > { %2525 = shalt.err (!%p2522_p3)
}
 0x4c7   : > { %2146 = dma.vmem_to_hbm [thread:$0]  (%p2881_p2), %s1788_s4, 128, %s1785_s27, %s1773_s18  }
 0x4c8 PF: > { %s1799_s13 = sand.u32 1, %s2620_s30   ;;  %p3295_p5 = scmp.ne.s32.totalorder %s3280_s29, 0 }
 0x4c9   : > { %p3296_p0 = scmp.ge.s32.totalorder %s2640_s14, 2  ;;  %s1800_s1 = scalar_lea.sflag [#allocation7], %s1799_s13 }
 0x4cb   : > { %p2166_p8 = pnand %p3296_p0, %p3295_p5 }
 0x4cd   : > { %p2167_p7 = pneg %p2166_p8 }
 0x4cf   : > { %2615 = dma.done.wait (%p2167_p7), %s1800_s1, 128  }
 0x4d0   : > { %2617 = vsyncadd (%p2167_p7), %s1800_s1, 4294967168  ;;  %s27_s14 = sadd.s32 1, %s2640_s14   ;;  %s3297_s12 = sld [smem:[#allocation19_spill]] }
 0x4d1   : > { %p24_p9 = scmp.ge.s32.totalorder %s27_s14, 4   ;;  %s3298_s13 = sld [smem:[#allocation20_spill]] }
 0x4d2   : > { %s3299_s30 = smov %s2624_s10  ;;  %s3300_s10 = smov %s2628_s11 }
 0x4d3   : > { %s3301_s11 = smov %s2886_s22  ;;  %26 = sbr.rel (!%p24_p9) target bundleno = 13 (0xd), region = 151 }
 0x4d8   :  { %1805 = vsyncpa [#allocation6], 1 }
 0x4d9   :  { %1807 = vsyncpa [#allocation6 + $0x1], 1 }
 0x4da   :  { %1808 = vsyncpa [#allocation9], 1 }
 0x4db   :  { %1809 = vsyncpa [#allocation12], 1 }
 0x4dc   :  { %1810 = vsyncpa [#allocation7], 1 }
 0x4dd   :  { %1812 = vsyncpa [#allocation7 + $0x1], 1 }

</bundles_post_ra>
